<compile_context>
chip_gen: v7x
topology: tpu7x:2x2x1
jax: 0.10.0
libtpu: 0.0.40
codegen_flags: <defaults>
</compile_context>

<pallas_src>
import jax
import jax.numpy as jnp
from jax.experimental import pallas as pl
from jax.experimental.pallas import tpu as pltpu


def _round_up(x, m):
    return ((x + m - 1) // m) * m


# --------------------------------------------------------------------------
# Fast path: whole (padded) vocab fits in one tile -> fused single pass.
# --------------------------------------------------------------------------
def _fused_kernel(x_ref, w_ref, b_ref, o_ref):
    # MXU: bf16 x bf16 -> f32 accumulation; bias + softmax in f32.
    logits = jnp.dot(x_ref[...], w_ref[...],
                     preferred_element_type=jnp.float32) + b_ref[...]
    m = jnp.max(logits, axis=-1, keepdims=True)
    shifted = logits - m
    lse = jnp.log(jnp.sum(jnp.exp(shifted), axis=-1, keepdims=True))
    o_ref[...] = (shifted - lse).astype(o_ref.dtype)


# --------------------------------------------------------------------------
# General path, pass 1: tiled matmul + bias -> raw logits, plus online LSE.
# --------------------------------------------------------------------------
def _logits_lse_kernel(x_ref, w_ref, b_ref, logits_ref, lse_ref, m_ref, l_ref):
    j = pl.program_id(1)                      # vocab tile index (innermost)

    @pl.when(j == 0)
    def _init():
        m_ref[...] = jnp.full_like(m_ref, -1e30)   # finite "-inf" (no NaNs)
        l_ref[...] = jnp.zeros_like(l_ref)

    logits = jnp.dot(x_ref[...], w_ref[...],
                     preferred_element_type=jnp.float32) + b_ref[...]
    logits_ref[...] = logits                  # lane-dense (tn % 128 == 0) store

    # Online (rescaled) softmax statistics per row.
    m_old = m_ref[...]
    m_new = jnp.maximum(m_old, jnp.max(logits, axis=-1, keepdims=True))
    alpha = jnp.exp(m_old - m_new)
    l_ref[...] = l_ref[...] * alpha + jnp.sum(jnp.exp(logits - m_new),
                                              axis=-1, keepdims=True)
    m_ref[...] = m_new

    @pl.when(j == pl.num_programs(1) - 1)
    def _finalize():
        lse_ref[...] = m_ref[...] + jnp.log(l_ref[...])


# --------------------------------------------------------------------------
# General path, pass 2: log_probs = logits - lse (in place when aliasable).
# --------------------------------------------------------------------------
def _normalize_kernel(logits_ref, lse_ref, o_ref):
    o_ref[...] = (logits_ref[...] - lse_ref[...]).astype(o_ref.dtype)


def generator_forward(x, w, b, *, tm=128, tn=1024,
                      compute_dtype=jnp.bfloat16, out_dtype=jnp.float32):
    """log_softmax(x @ w + b, axis=-1).

    x: [batch, seq, d_model];  w: [d_model, vocab];  b: [vocab].
    """
    batch, seq, d_model = x.shape
    vocab = w.shape[1]
    M = batch * seq

    # ---- tile sizes; remainders handled by padding, no divisibility asserts.
    tm = min(tm, _round_up(M, 8))            # f32/bf16 sublane-friendly
    tn = min(tn, _round_up(vocab, 128))      # lane-dense vocab tiles
    M_pad = _round_up(M, tm)
    V_pad = _round_up(vocab, tn)
    n_i = M_pad // tm
    n_j = V_pad // tn

    # ---- prepare (cast to bf16 for the MXU; pad remainders).
    x2d = x.reshape(M, d_model).astype(compute_dtype)
    w_c = w.astype(compute_dtype)
    b_f = b.astype(jnp.float32)
    if M_pad != M:
        x2d = jnp.pad(x2d, ((0, M_pad - M), (0, 0)))
    if V_pad != vocab:
        # Padded vocab columns: zero weight + very negative bias => exp()==0,
        # so they never perturb the log-sum-exp of the real columns.
        w_c = jnp.pad(w_c, ((0, 0), (0, V_pad - vocab)))
        b_f = jnp.pad(b_f, (0, V_pad - vocab), constant_values=-1e9)
    b2d = b_f.reshape(1, V_pad)

    cparams = pltpu.CompilerParams(
        dimension_semantics=("parallel", "arbitrary"),
        vmem_limit_bytes=64 * 1024 * 1024,   # safe on v5e/v6e/v7x, >> need
    )

    if n_j == 1:
        # ---- small/moderate vocab: single fused pass (weight tile resident).
        out2d = pl.pallas_call(
            _fused_kernel,
            out_shape=jax.ShapeDtypeStruct((M_pad, V_pad), out_dtype),
            grid_spec=pltpu.PrefetchScalarGridSpec(
                num_scalar_prefetch=0,
                grid=(n_i,),
                in_specs=[
                    pl.BlockSpec((tm, d_model), lambda i: (i, 0)),
                    pl.BlockSpec((d_model, V_pad), lambda i: (0, 0)),
                    pl.BlockSpec((1, V_pad), lambda i: (0, 0)),
                ],
                out_specs=pl.BlockSpec((tm, V_pad), lambda i: (i, 0)),
            ),
            compiler_params=pltpu.CompilerParams(
                dimension_semantics=("parallel",),
                vmem_limit_bytes=64 * 1024 * 1024),
        )(x2d, w_c, b2d)
        return out2d[:M, :vocab].reshape(batch, seq, vocab)

    # ---- pass 1: stream weight vocab-tiles; raw logits + online LSE stats.
    logits2d, lse2d = pl.pallas_call(
        _logits_lse_kernel,
        out_shape=(
            jax.ShapeDtypeStruct((M_pad, V_pad), jnp.float32),
            jax.ShapeDtypeStruct((M_pad, 1), jnp.float32),
        ),
        grid_spec=pltpu.PrefetchScalarGridSpec(
            num_scalar_prefetch=0,
            grid=(n_i, n_j),                       # vocab (reduction) axis last
            in_specs=[
                pl.BlockSpec((tm, d_model), lambda i, j: (i, 0)),
                pl.BlockSpec((d_model, tn), lambda i, j: (0, j)),
                pl.BlockSpec((1, tn),       lambda i, j: (0, j)),
            ],
            out_specs=[
                pl.BlockSpec((tm, tn), lambda i, j: (i, j)),  # raw logits
                pl.BlockSpec((tm, 1),  lambda i, j: (i, 0)),  # lse (resident over j)
            ],
            scratch_shapes=[
                pltpu.VMEM((tm, 1), jnp.float32),   # running max
                pltpu.VMEM((tm, 1), jnp.float32),   # running sum of exp
            ],
        ),
        compiler_params=cparams,
    )(x2d, w_c, b2d)

    # ---- pass 2: subtract lse; reuse the logits HBM buffer when possible.
    aliases = {0: 0} if out_dtype == logits2d.dtype else {}
    out2d = pl.pallas_call(
        _normalize_kernel,
        out_shape=jax.ShapeDtypeStruct((M_pad, V_pad), out_dtype),
        grid=(n_i, n_j),
        in_specs=[
            pl.BlockSpec((tm, tn), lambda i, j: (i, j)),
            pl.BlockSpec((tm, 1),  lambda i, j: (i, 0)),
        ],
        out_specs=pl.BlockSpec((tm, tn), lambda i, j: (i, j)),
        compiler_params=pltpu.CompilerParams(
            dimension_semantics=("parallel", "parallel"),
            vmem_limit_bytes=64 * 1024 * 1024),
        input_output_aliases=aliases,
    )(logits2d, lse2d)

    return out2d[:M, :vocab].reshape(batch, seq, vocab)


if __name__ == "__main__":
    k1, k2 = jax.random.split(jax.random.PRNGKey(0))

    def make_inputs(key, batch, seq, d_model, vocab):
        kx, kw, kb = jax.random.split(key, 3)
        x = jax.random.normal(kx, (batch, seq, d_model), dtype=jnp.float32)
        bound = 1.0 / (d_model ** 0.5)
        w = jax.random.uniform(kw, (d_model, vocab), jnp.float32, -bound, bound)
        b = jax.random.uniform(kb, (vocab,), jnp.float32, -bound, bound)
        return x, w, b

    def reference(x, w, b):
        # Same numerics as the kernel: bf16 MXU inputs, f32 accumulation.
        logits = jnp.einsum("bsd,dv->bsv",
                            x.astype(jnp.bfloat16), w.astype(jnp.bfloat16),
                            preferred_element_type=jnp.float32) + b
        return jax.nn.log_softmax(logits, axis=-1)

    # Config 1: single vocab tile -> fused single-pass kernel.
    x1, w1, b1 = make_inputs(k1, 2, 8, 32, 128)
    out1 = jax.block_until_ready(jax.jit(generator_forward)(x1, w1, b1))
    ref1 = reference(x1, w1, b1)
    assert out1.shape == (2, 8, 128)
    assert jnp.allclose(out1, ref1, atol=1e-4, rtol=1e-4), \
        float(jnp.max(jnp.abs(out1 - ref1)))

    # Config 2: multi-tile grid (3 row tiles x 3 vocab tiles) with remainders
    # on both M and vocab -> exercises the tiled online-LSE two-pass path.
    x2, w2, b2 = make_inputs(k2, 2, 9, 48, 300)
    fwd2 = jax.jit(generator_forward, static_argnames=("tm", "tn"))
    out2 = jax.block_until_ready(fwd2(x2, w2, b2, tm=8, tn=128))
    ref2 = reference(x2, w2, b2)
    assert out2.shape == (2, 9, 300)
    assert jnp.allclose(out2, ref2, atol=1e-4, rtol=1e-4), \
        float(jnp.max(jnp.abs(out2 - ref2)))

    print("KERNEL_OK")
</pallas_src>

<mosaic_0001>
module attributes {stable_mosaic.version = 11 : i64} {
  func.func @_fused_kernel(%arg0: i32, %arg1: memref<16x32xbf16, #tpu.memory_space<vmem>>, %arg2: memref<32x128xbf16, #tpu.memory_space<vmem>>, %arg3: memref<1x128xf32, #tpu.memory_space<vmem>>, %arg4: memref<16x128xf32, #tpu.memory_space<vmem>>) attributes {dimension_semantics = [#tpu.dimension_semantics<parallel>], iteration_bounds = array<i64: 1>, scalar_prefetch = 0 : i64, scratch_operands = 0 : i64, tpu.core_type = #tpu.core_type<tc>, window_params = [{transform_indices = @transform_0, window_bounds = array<i64: 16, 32>}, {pipeline_mode = #tpu.pipeline_mode<synchronous>, transform_indices = @transform_1, window_bounds = array<i64: 32, 128>}, {pipeline_mode = #tpu.pipeline_mode<synchronous>, transform_indices = @transform_2, window_bounds = array<i64: 1, 128>}, {transform_indices = @transform_3, window_bounds = array<i64: 16, 128>}]} {
    %c0 = arith.constant 0 : index
    %c0_0 = arith.constant 0 : index
    %0 = vector.load %arg1[%c0, %c0_0] : memref<16x32xbf16, #tpu.memory_space<vmem>>, vector<16x32xbf16>
    %c0_1 = arith.constant 0 : index
    %c0_2 = arith.constant 0 : index
    %1 = vector.load %arg2[%c0_1, %c0_2] : memref<32x128xbf16, #tpu.memory_space<vmem>>, vector<32x128xbf16>
    %cst = arith.constant dense<0.000000e+00> : vector<16x128xf32>
    %2 = tpu.matmul %0, %1, %cst {dimension_numbers = #tpu.dot_dimension_numbers<[1], [0], [0], [1], [0, 0, 1, 1], [], []>} : vector<16x32xbf16>, vector<32x128xbf16>, vector<16x128xf32> -> vector<16x128xf32>
    %c0_3 = arith.constant 0 : index
    %c0_4 = arith.constant 0 : index
    %3 = vector.load %arg3[%c0_3, %c0_4] : memref<1x128xf32, #tpu.memory_space<vmem>>, vector<1x128xf32>
    %4 = vector.broadcast %3 : vector<1x128xf32> to vector<16x128xf32>
    %5 = arith.addf %2, %4 : vector<16x128xf32>
    %cst_5 = arith.constant dense<0xFF800000> : vector<16xf32>
    %6 = vector.multi_reduction <maximumf>, %5, %cst_5 [1] : vector<16x128xf32> to vector<16xf32>
    %7 = vector.shape_cast %6 : vector<16xf32> to vector<16x1xf32>
    %8 = vector.broadcast %7 : vector<16x1xf32> to vector<16x128xf32>
    %9 = arith.subf %5, %8 : vector<16x128xf32>
    %10 = math.exp %9 : vector<16x128xf32>
    %cst_6 = arith.constant dense<0.000000e+00> : vector<16xf32>
    %11 = vector.multi_reduction <add>, %10, %cst_6 [1] : vector<16x128xf32> to vector<16xf32>
    %12 = vector.shape_cast %11 : vector<16xf32> to vector<16x1xf32>
    %13 = math.log %12 : vector<16x1xf32>
    %14 = vector.broadcast %13 : vector<16x1xf32> to vector<16x128xf32>
    %15 = arith.subf %9, %14 : vector<16x128xf32>
    %c0_7 = arith.constant 0 : index
    %c0_8 = arith.constant 0 : index
    %16 = vector.load %arg4[%c0_7, %c0_8] : memref<16x128xf32, #tpu.memory_space<vmem>>, vector<16x128xf32>
    tpu.vector_store %arg4[%c0_7, %c0_8], %15 {strides = array<i32>} : memref<16x128xf32, #tpu.memory_space<vmem>>, vector<16x128xf32>,
    return
  }
  func.func @transform_0(%arg0: i32) -> (i32, i32) {
    %c0_i32 = arith.constant 0 : i32
    %c0_i32_0 = arith.constant 0 : i32
    return %arg0, %c0_i32 : i32, i32
  }
  func.func @transform_1(%arg0: i32) -> (i32, i32) {
    %c0_i32 = arith.constant 0 : i32
    %c0_i32_0 = arith.constant 0 : i32
    %c0_i32_1 = arith.constant 0 : i32
    return %c0_i32, %c0_i32_0 : i32, i32
  }
  func.func @transform_2(%arg0: i32) -> (i32, i32) {
    %c0_i32 = arith.constant 0 : i32
    %c0_i32_0 = arith.constant 0 : i32
    %c0_i32_1 = arith.constant 0 : i32
    return %c0_i32, %c0_i32_0 : i32, i32
  }
  func.func @transform_3(%arg0: i32) -> (i32, i32) {
    %c0_i32 = arith.constant 0 : i32
    %c0_i32_0 = arith.constant 0 : i32
    return %arg0, %c0_i32 : i32, i32
  }
}

</mosaic_0001>

<bundles_post_ra>
// kernel: generator_forward.1
= control target key start
LH: loop header
LB: loop body
LE: loop exit
PB: predicated region body
PF: predicated region fallthrough
CT: control target
= control target key end

     0   :  { %8 = vsyncpa [#allocation3], 0  ;;  %s386_s0 = inlined_call_operand.hbm [shape: bf16[16,32], index: 0, kind: input, shape index: {}]   ;;  %s387_s1 = inlined_call_operand.hbm [shape: bf16[32,128], index: 1, kind: input, shape index: {}]   ;;  %s388_s2 = inlined_call_operand.hbm [shape: f32[1,128], index: 2, kind: input, shape index: {}]   ;;  %s389_s3 = inlined_call_operand.hbm [shape: f32[16,128], index: 3, kind: output, shape index: {}]  }
   0x1   :  { %9 = vsyncpa [#allocation6], 0 }
   0x2   :  { %10 = vsyncpa [#allocation4], 0  ;;  %s301_s12 = smov [#allocation5]   ;;  %s302_s14 = smov [#allocation2]  }
   0x3   :  { %s28_s13 = sshll.u32 %s301_s12, 4  ;;  %s16_s15 = sshll.u32 %s302_s14, 4  ;;  %s29_s13 = int_to_ptr.vmem [resolvable:$true] %s28_s13  ;;  %s331_s15 = int_to_ptr.vmem [resolvable:$true] %s16_s15 }
   0x4   :  { %s207_s18 = scalar_lea.hbm %s387_s1, 256 }
   0x5   :  { %p208_p0 = scmp.ne.s32.totalorder %s387_s1, %s207_s18  ;;  %p211_p1 = scmp.lt.u32.totalorder %s207_s18, %s387_s1 }
   0x7   :  { %p213_p2 = pnand %p211_p1, %p208_p0 }
   0x9   :  { %216 = shalt.err (!%p213_p2)
}
   0xa   :  { %s217_s23 = scalar_lea.vmem %s29_s13, 256  ;;  %p222_p4 = scmp.lt.s32.totalorder %s29_s13, %s29_s13 }
   0xb   :  { %p218_p3 = scmp.ne.s32.totalorder %s29_s13, %s217_s23  ;;  %p223_p5 = scmp.lt.s32.totalorder %s217_s23, %s217_s23 }
   0xd   :  { %p224_p6 = por %p223_p5, %p222_p4 }
   0xf   :  { %p225_p7 = pnand %p224_p6, %p218_p3 }
  0x11   :  { %228 = shalt.err (!%p225_p7)
}
  0x12   :  { %s303_s24 = smov 64   ;;  %s304_s25 = smov 4  }
  0x13   :  { %34 = dma.hbm_to_vmem [thread:$0]  %s387_s1, 256, %s29_s13, [#allocation6], %s303_s24, %s303_s24, %s304_s25  }
  0x14   :  { %s229_s30 = scalar_lea.hbm %s386_s0, 128 }
  0x15   :  { %p230_p8 = scmp.ne.s32.totalorder %s386_s0, %s229_s30  ;;  %p233_p9 = scmp.lt.u32.totalorder %s229_s30, %s386_s0 }
  0x17   :  { %p235_p10 = pnand %p233_p9, %p230_p8 }
  0x19   :  { %238 = shalt.err (!%p235_p10)
}
  0x1a   :  { %s239_s8 = scalar_lea.vmem %s331_s15, 128  ;;  %p244_p12 = scmp.lt.s32.totalorder %s331_s15, %s331_s15 }
  0x1b   :  { %p240_p11 = scmp.ne.s32.totalorder %s331_s15, %s239_s8  ;;  %p245_p13 = scmp.lt.s32.totalorder %s239_s8, %s239_s8 }
  0x1d   :  { %p246_p0 = por %p245_p13, %p244_p12 }
  0x1f   :  { %p247_p1 = pnand %p246_p0, %p240_p11 }
  0x21   :  { %250 = shalt.err (!%p247_p1)
}
  0x22   :  { %22 = dma.hbm_to_vmem [thread:$0]  %s386_s0, 128, %s331_s15, [#allocation3], %s303_s24, %s303_s24, %s304_s25  }
  0x23   :  { %s305_s10 = smov [#allocation7]   ;;  %s251_s14 = scalar_lea.hbm %s388_s2, 16 }
  0x24   :  { %s41_s11 = sshll.u32 %s305_s10, 4  ;;  %p252_p2 = scmp.ne.s32.totalorder %s388_s2, %s251_s14  ;;  %s42_s11 = int_to_ptr.vmem [resolvable:$true] %s41_s11 }
  0x25   :  { %p255_p3 = scmp.lt.u32.totalorder %s251_s14, %s388_s2 }
  0x27   :  { %p257_p4 = pnand %p255_p3, %p252_p2 }
  0x29   :  { %260 = shalt.err (!%p257_p4)
}
  0x2a   :  { %s261_s20 = scalar_lea.vmem %s42_s11, 16  ;;  %s265_s0 = scalar_lea.vmem %s42_s11, 32 }
  0x2b   :  { %p262_p5 = scmp.ne.s32.totalorder %s42_s11, %s261_s20  ;;  %p266_p6 = scmp.lt.s32.totalorder %s42_s11, %s42_s11 }
  0x2c   :  { %p267_p7 = scmp.lt.s32.totalorder %s265_s0, %s261_s20 }
  0x2e   :  { %p268_p8 = por %p267_p7, %p266_p6 }
  0x30   :  { %p269_p9 = pnand %p268_p8, %p262_p5 }
  0x32   :  { %272 = shalt.err (!%p269_p9)
}
  0x33   :  { %44 = dma.hbm_to_vmem [thread:$0]  %s388_s2, 16, %s42_s11, [#allocation6]  }
  0x34   :  { %295 = dma.done.wait [#allocation3], 128  }
  0x35   :  { %296 = vsyncadd [#allocation3], 4294967168 }
  0x36   :  { %297 = dma.done.wait [#allocation6], 272  }
  0x37   :  { %298 = vsyncadd [#allocation6], 4294967024  ;;  %v306_v0 = vmov 0.0   ;;  %vm307_vm0 = vmmov 0   ;;  %v196_v1 = vld [vmem:[#allocation5] sm:$0xff]   ;;  %v197_v2 = vld [vmem:[#allocation5 + $0x8] sm:$0xff]  }
  0x38   :  { %178 = vmatprep.subr.bf16.mxu0 %v306_v0  ;;  %182 = vmatprep.mubr.msk.bf16.mxu0 %vm307_vm0, %v306_v0  ;;  %v198_v3 = vld [vmem:[#allocation2] sm:$0xff]   ;;  %vm85_vm1 = vcmask 261120   ;;  %v170_v4 = vld [vmem:[#allocation7] ss:$0 sm:$0xff]  ;;  %s308_s2 = smov [#allocation8]  }
  0x39   :  { %179 = vmatpush3.bf16.msra.mxu0 %v196_v1  ;;  %s157_s22 = sshll.u32 %s308_s2, 4  ;;  %s158_s22 = int_to_ptr.vmem [resolvable:$true] %s157_s22 }
  0x3a   :  { %180 = vmatprep.subr.bf16.mxu0 %v306_v0  ;;  %s273_s23 = scalar_lea.vmem %s158_s22, 256  ;;  %p278_p11 = scmp.lt.s32.totalorder %s158_s22, %s158_s22 }
  0x3b   :  { %p274_p10 = scmp.ne.s32.totalorder %s158_s22, %s273_s23  ;;  %p279_p12 = scmp.lt.s32.totalorder %s273_s23, %s273_s23 }
  0x3d   :  { %181 = vmatpush3.bf16.msra.mxu0 %v197_v2  ;;  %p280_p13 = por %p279_p12, %p278_p11 }
  0x3f   :  { %p281_p0 = pnand %p280_p13, %p274_p10 }
  0x40   :  { %183 = vmatmul.mubr.msk.bf16.vlgmr.msra.gmra.mrb[0].mxu0 %vm85_vm1, %v198_v3 }
 0x113   :  { %v123_v5 = vpop.f32.mrb[0].mxu0 }
 0x114   :  { %v124_v6 = vadd.f32 %v170_v4, %v123_v5  ;;  %v184_v7 = vpop.f32.mrb[1].mxu0 }
 0x115   :  { %v126_v8 = vpop.f32.mrb[2].mxu0 }
 0x116   :  { %130 = vmax.xlane.f32.xlu0 %v124_v6  ;;  %v185_v9 = vpop.f32.mrb[3].mxu0  ;;  %v127_v10 = vadd.f32 %v170_v4, %v126_v8 }
 0x11a   :  { %132 = vmax.xlane.f32.xlu0 %v127_v10 }
 0x1a3   :  { %v131_v11 = vpop.xlane.xlu0 %130 }
 0x1a4   :  { %v134_v12 = vsub.f32 %v124_v6, %v131_v11 }
 0x1a6   :  { %v136_v13 = vmul.f32 1.442695, %v134_v12 }
 0x1a7   :  { %v133_v14 = vpop.xlane.xlu0 %132 }
 0x1a8   :  { %v135_v15 = vsub.f32 %v127_v10, %v133_v14  ;;  %199 = vpow2.f32 %v136_v13 }
 0x1aa   :  { %v138_v16 = vmul.f32 1.442695, %v135_v15 }
 0x1ac   :  { %201 = vpow2.f32 %v138_v16 }
 0x1b2   :  { %v200_v17 = vpop.eup %199 }
 0x1b3   :  { %140 = vadd.xlane.f32.xlu1 %v200_v17 }
 0x1b6   :  { %v202_v18 = vpop.eup %201 }
 0x1b7   :  { %142 = vadd.xlane.f32.xlu1 %v202_v18 }
 0x240   :  { %v141_v19 = vpop.xlane.xlu1 %140 }
 0x241   :  { %203 = vlog2.f32 %v141_v19 }
 0x244   :  { %v143_v20 = vpop.xlane.xlu1 %142 }
 0x245   :  { %205 = vlog2.f32 %v143_v20 }
 0x24b   :  { %v204_v21 = vpop.eup %203 }
 0x24c   :  { %v145_v22 = vmul.f32 0.6931472, %v204_v21 }
 0x24e   :  { %v148_v23 = vsub.f32 %v134_v12, %v145_v22 }
 0x24f   :  { %v206_v24 = vpop.eup %205 }
 0x250   :  { %150 = vst [vmem:[#allocation8] sm:$0xff] %v148_v23  ;;  %v147_v25 = vmul.f32 0.6931472, %v206_v24 }
 0x252   :  { %v149_v26 = vsub.f32 %v135_v15, %v147_v25 }
 0x254   :  { %151 = vst [vmem:[#allocation8 + $0x8] sm:$0xff] %v149_v26 }
 0x255   :  { %284 = shalt.err (!%p281_p0)
}
 0x256   :  { %s285_s26 = scalar_lea.hbm %s389_s3, 256 }
 0x257   :  { %p286_p1 = scmp.ne.s32.totalorder %s389_s3, %s285_s26  ;;  %p289_p2 = scmp.lt.u32.totalorder %s285_s26, %s389_s3 }
 0x259   :  { %p291_p3 = pnand %p289_p2, %p286_p1 }
 0x25b   :  { %294 = shalt.err (!%p291_p3)
}
 0x25c   :  { %s309_s4 = smov 128   ;;  %s310_s5 = smov 8  }
 0x25d   :  { %163 = dma.vmem_to_hbm [thread:$0]  %s158_s22, 256, %s389_s3, [#allocation4], %s309_s4, %s309_s4, %s310_s5  }
 0x25e   :  { %299 = dma.done.wait [#allocation4], 256  }
 0x25f   :  { %300 = vsyncadd [#allocation4], 4294967040 }
 0x260   :  { %167 = vsyncpa [#allocation3], 1 }
 0x261   :  { %168 = vsyncpa [#allocation6], 1 }
 0x262   :  { %169 = vsyncpa [#allocation4], 1 }

</bundles_post_ra>
